<compile_context>
chip_gen: v5e
topology: v5e:2x2
jax: 0.10.0
libtpu: 0.0.40
codegen_flags: <defaults>
</compile_context>

<pallas_src>
import functools

import jax
import jax.numpy as jnp
from jax.experimental import pallas as pl
from jax.experimental.pallas import tpu as pltpu


def _round_up(x, m):
    return ((x + m - 1) // m) * m


def _elementwise_dtype_for_device():
    """bf16 elementwise on v6e/v7x (bf16 VPU/EUP); f32 on v5e and older."""
    try:
        kind = jax.devices()[0].device_kind.lower()
    except Exception:
        return jnp.float32
    for old in ("v2", "v3", "v4", "v5"):
        if old in kind:
            return jnp.float32
    return jnp.bfloat16


def _pick_tile_b(B, tile_b, tile_b_max=4096):
    """Large tiles amortize per-grid-step overhead; keep >=2 steps when the
    batch is big enough so the parallel batch axis can use both v7x cores."""
    if tile_b is None:
        t = _round_up(pl.cdiv(B, 2), 8)
        tile_b = max(512, min(tile_b_max, t))
    return min(tile_b, _round_up(B, 8))


def multimodal_kernel(q_ref, i_ref, wq_ref, bq_ref, wi_ref, bi_ref,
                      wo_ref, bo_ref, o_ref, *, ew_dtype):
    mm_dtype = wq_ref.dtype  # bf16 MXU inputs; accumulation stays f32.

    # Two aligned projections (one per modality): bf16 MXU, f32 accumulate.
    q_h = jnp.dot(q_ref[...], wq_ref[...], preferred_element_type=jnp.float32)
    i_h = jnp.dot(i_ref[...], wi_ref[...], preferred_element_type=jnp.float32)

    # Bias add in f32, then tanh + multiply in the per-generation elementwise
    # dtype (bf16 on v6e/v7x, f32 on v5e -- no bf16 VPU/EUP path there).
    q_h = jnp.tanh((q_h + bq_ref[...]).astype(ew_dtype))
    i_h = jnp.tanh((i_h + bi_ref[...]).astype(ew_dtype))

    # TODO(synk): nn.Dropout omitted (eval-mode identity); training mode would
    # need pltpu.prng_seed / pltpu.prng_random_bits masking here.
    fused = q_h * i_h

    # Output projection: bf16 MXU inputs, f32 accumulate + f32 bias.
    out = jnp.dot(fused.astype(mm_dtype), wo_ref[...],
                  preferred_element_type=jnp.float32) + bo_ref[...]
    o_ref[...] = out.astype(o_ref.dtype)


def multimodal_forward(q, i, params, *, tile_b=None,
                       matmul_dtype=jnp.bfloat16, out_dtype=jnp.bfloat16):
    """q: (B, q_dim), i: (B, i_dim). Returns (B, noutput) in `out_dtype`."""
    wq, bq, wi, bi, wo, bo = params
    B, q_dim = q.shape
    i_dim = i.shape[1]
    C = wq.shape[1]
    N = wo.shape[1]

    # ---- operand dtype prep (cheap; ideally callers already hold bf16) ----
    q_mm = q.astype(matmul_dtype) if q.dtype != matmul_dtype else q
    i_mm = i.astype(matmul_dtype) if i.dtype != matmul_dtype else i
    wq_mm = wq.astype(matmul_dtype)
    wi_mm = wi.astype(matmul_dtype)
    wo_mm = wo.astype(matmul_dtype)
    bq2 = bq.reshape(1, C).astype(jnp.float32)
    bi2 = bi.reshape(1, C).astype(jnp.float32)
    bo2 = bo.reshape(1, N).astype(jnp.float32)

    ew_dtype = _elementwise_dtype_for_device()

    # ---- batch tiling (no padding: ragged last block is masked on store) --
    tile_b = _pick_tile_b(B, tile_b)
    grid = (pl.cdiv(B, tile_b),)

    nbytes = lambda a: a.size * a.dtype.itemsize
    cost = pl.CostEstimate(
        flops=2 * B * (q_dim * C + i_dim * C + C * N),
        transcendentals=2 * B * C,
        bytes_accessed=(nbytes(q_mm) + nbytes(i_mm)
                        + nbytes(wq_mm) + nbytes(wi_mm) + nbytes(wo_mm)
                        + nbytes(bq2) + nbytes(bi2) + nbytes(bo2)
                        + B * N * jnp.dtype(out_dtype).itemsize),
    )

    kernel = functools.partial(multimodal_kernel, ew_dtype=ew_dtype)

    # Weight/bias blocks use constant index_maps so they stay resident across
    # the batch grid (no re-DMA).  They total ~12 KB, so the default second
    # pipeline buffer is negligible; pipeline_mode=pl.Buffered(1) omitted for
    # lowering robustness.
    out = pl.pallas_call(
        kernel,
        out_shape=jax.ShapeDtypeStruct((B, N), out_dtype),
        grid_spec=pltpu.PrefetchScalarGridSpec(
            num_scalar_prefetch=0,
            grid=grid,
            in_specs=[
                pl.BlockSpec((tile_b, q_dim), lambda b: (b, 0)),   # q
                pl.BlockSpec((tile_b, i_dim), lambda b: (b, 0)),   # i
                pl.BlockSpec((q_dim, C), lambda b: (0, 0)),        # Wq
                pl.BlockSpec((1, C), lambda b: (0, 0)),            # bq
                pl.BlockSpec((i_dim, C), lambda b: (0, 0)),        # Wi
                pl.BlockSpec((1, C), lambda b: (0, 0)),            # bi
                pl.BlockSpec((C, N), lambda b: (0, 0)),            # Wo
                pl.BlockSpec((1, N), lambda b: (0, 0)),            # bo
            ],
            out_specs=pl.BlockSpec((tile_b, N), lambda b: (b, 0)),
        ),
        compiler_params=pltpu.CompilerParams(
            dimension_semantics=("parallel",)),
        cost_estimate=cost,
    )(q_mm, i_mm, wq_mm, bq2, wi_mm, bi2, wo_mm, bo2)
    return out


def init_params(key, q_dim, i_dim, common, noutput, dtype=jnp.float32):
    """Deterministic synthetic parameters (PyTorch Linear weights pre-transposed)."""
    ks = jax.random.split(key, 6)
    # PyTorch Linear weight is (out, in); store transposed as (in, out).
    wq = jax.random.normal(ks[0], (q_dim, common), dtype) * 0.05
    bq = jax.random.normal(ks[1], (common,), dtype) * 0.05
    wi = jax.random.normal(ks[2], (i_dim, common), dtype) * 0.05
    bi = jax.random.normal(ks[3], (common,), dtype) * 0.05
    wo = jax.random.normal(ks[4], (common, noutput), dtype) * 0.05
    bo = jax.random.normal(ks[5], (noutput,), dtype) * 0.05
    return (wq, bq, wi, bi, wo, bo)


def reference_forward(q, i, params):
    wq, bq, wi, bi, wo, bo = params
    q_proj = jnp.tanh(q @ wq + bq)
    i_proj = jnp.tanh(i @ wi + bi)
    return (q_proj * i_proj) @ wo + bo


if __name__ == "__main__":
    # Small shapes consistent with the module's forward.
    B, Q_DIM, I_DIM, COMMON, NOUT = 8, 32, 48, 64, 16

    key = jax.random.PRNGKey(0)
    kq, ki, kp, kq2, ki2 = jax.random.split(key, 5)
    q = jax.random.normal(kq, (B, Q_DIM), jnp.float32)
    i = jax.random.normal(ki, (B, I_DIM), jnp.float32)
    params = init_params(kp, Q_DIM, I_DIM, COMMON, NOUT)

    out = jax.block_until_ready(multimodal_forward(q, i, params))
    ref = reference_forward(q, i, params)
    assert out.shape == (B, NOUT)
    # bf16 MXU inputs / bf16 output store with f32 accumulation -> loose tol.
    assert jnp.allclose(out.astype(jnp.float32), ref, atol=2e-2, rtol=2e-2), \
        "mismatch (small batch)"

    # Ragged, multi-tile batch: exercises the non-divisible grid (masked tail
    # stores) and the multi-step pipelined / megacore-parallel batch axis.
    B2 = 1000
    q2 = jax.random.normal(kq2, (B2, Q_DIM), jnp.float32)
    i2 = jax.random.normal(ki2, (B2, I_DIM), jnp.float32)
    out2 = jax.block_until_ready(multimodal_forward(q2, i2, params))
    ref2 = reference_forward(q2, i2, params)
    assert out2.shape == (B2, NOUT)
    assert jnp.allclose(out2.astype(jnp.float32), ref2, atol=2e-2, rtol=2e-2), \
        "mismatch (large batch)"

    # Also verify the module-exact f32 output path.
    out3 = jax.block_until_ready(
        multimodal_forward(q, i, params, out_dtype=jnp.float32))
    assert out3.dtype == jnp.float32
    assert jnp.allclose(out3, ref, atol=2e-2, rtol=2e-2), "mismatch (f32 out)"

    print("KERNEL_OK")
</pallas_src>

<mosaic_0001>
module attributes {stable_mosaic.version = 11 : i64} {
  func.func @multimodal_kernel(%arg0: i32, %arg1: memref<8x32xbf16, #tpu.memory_space<vmem>>, %arg2: memref<8x48xbf16, #tpu.memory_space<vmem>>, %arg3: memref<32x64xbf16, #tpu.memory_space<vmem>>, %arg4: memref<1x64xf32, #tpu.memory_space<vmem>>, %arg5: memref<48x64xbf16, #tpu.memory_space<vmem>>, %arg6: memref<1x64xf32, #tpu.memory_space<vmem>>, %arg7: memref<64x16xbf16, #tpu.memory_space<vmem>>, %arg8: memref<1x16xf32, #tpu.memory_space<vmem>>, %arg9: memref<8x16xbf16, #tpu.memory_space<vmem>>) attributes {dimension_semantics = [#tpu.dimension_semantics<parallel>], iteration_bounds = array<i64: 1>, scalar_prefetch = 0 : i64, scratch_operands = 0 : i64, tpu.core_type = #tpu.core_type<tc>, window_params = [{transform_indices = @transform_0, window_bounds = array<i64: 8, 32>}, {transform_indices = @transform_1, window_bounds = array<i64: 8, 48>}, {pipeline_mode = #tpu.pipeline_mode<synchronous>, transform_indices = @transform_2, window_bounds = array<i64: 32, 64>}, {pipeline_mode = #tpu.pipeline_mode<synchronous>, transform_indices = @transform_3, window_bounds = array<i64: 1, 64>}, {pipeline_mode = #tpu.pipeline_mode<synchronous>, transform_indices = @transform_4, window_bounds = array<i64: 48, 64>}, {pipeline_mode = #tpu.pipeline_mode<synchronous>, transform_indices = @transform_5, window_bounds = array<i64: 1, 64>}, {pipeline_mode = #tpu.pipeline_mode<synchronous>, transform_indices = @transform_6, window_bounds = array<i64: 64, 16>}, {pipeline_mode = #tpu.pipeline_mode<synchronous>, transform_indices = @transform_7, window_bounds = array<i64: 1, 16>}, {transform_indices = @transform_8, window_bounds = array<i64: 8, 16>}]} {
    %c0 = arith.constant 0 : index
    %c0_0 = arith.constant 0 : index
    %0 = vector.load %arg1[%c0, %c0_0] : memref<8x32xbf16, #tpu.memory_space<vmem>>, vector<8x32xbf16>
    %c0_1 = arith.constant 0 : index
    %c0_2 = arith.constant 0 : index
    %1 = vector.load %arg3[%c0_1, %c0_2] : memref<32x64xbf16, #tpu.memory_space<vmem>>, vector<32x64xbf16>
    %cst = arith.constant dense<0.000000e+00> : vector<8x64xf32>
    %2 = tpu.matmul %0, %1, %cst {dimension_numbers = #tpu.dot_dimension_numbers<[1], [0], [0], [1], [0, 0, 1, 1], [], []>} : vector<8x32xbf16>, vector<32x64xbf16>, vector<8x64xf32> -> vector<8x64xf32>
    %c0_3 = arith.constant 0 : index
    %c0_4 = arith.constant 0 : index
    %3 = vector.load %arg2[%c0_3, %c0_4] : memref<8x48xbf16, #tpu.memory_space<vmem>>, vector<8x48xbf16>
    %c0_5 = arith.constant 0 : index
    %c0_6 = arith.constant 0 : index
    %4 = vector.load %arg5[%c0_5, %c0_6] : memref<48x64xbf16, #tpu.memory_space<vmem>>, vector<48x64xbf16>
    %cst_7 = arith.constant dense<0.000000e+00> : vector<8x64xf32>
    %5 = tpu.matmul %3, %4, %cst_7 {dimension_numbers = #tpu.dot_dimension_numbers<[1], [0], [0], [1], [0, 0, 1, 1], [], []>} : vector<8x48xbf16>, vector<48x64xbf16>, vector<8x64xf32> -> vector<8x64xf32>
    %c0_8 = arith.constant 0 : index
    %c0_9 = arith.constant 0 : index
    %6 = vector.load %arg4[%c0_8, %c0_9] : memref<1x64xf32, #tpu.memory_space<vmem>>, vector<1x64xf32>
    %7 = vector.broadcast %6 : vector<1x64xf32> to vector<8x64xf32>
    %8 = arith.addf %2, %7 : vector<8x64xf32>
    %9 = arith.truncf %8 : vector<8x64xf32> to vector<8x64xbf16>
    %10 = math.tanh %9 : vector<8x64xbf16>
    %c0_10 = arith.constant 0 : index
    %c0_11 = arith.constant 0 : index
    %11 = vector.load %arg6[%c0_10, %c0_11] : memref<1x64xf32, #tpu.memory_space<vmem>>, vector<1x64xf32>
    %12 = vector.broadcast %11 : vector<1x64xf32> to vector<8x64xf32>
    %13 = arith.addf %5, %12 : vector<8x64xf32>
    %14 = arith.truncf %13 : vector<8x64xf32> to vector<8x64xbf16>
    %15 = math.tanh %14 : vector<8x64xbf16>
    %16 = arith.mulf %10, %15 : vector<8x64xbf16>
    %c0_12 = arith.constant 0 : index
    %c0_13 = arith.constant 0 : index
    %17 = vector.load %arg7[%c0_12, %c0_13] : memref<64x16xbf16, #tpu.memory_space<vmem>>, vector<64x16xbf16>
    %cst_14 = arith.constant dense<0.000000e+00> : vector<8x16xf32>
    %18 = tpu.matmul %16, %17, %cst_14 {dimension_numbers = #tpu.dot_dimension_numbers<[1], [0], [0], [1], [0, 0, 1, 1], [], []>} : vector<8x64xbf16>, vector<64x16xbf16>, vector<8x16xf32> -> vector<8x16xf32>
    %c0_15 = arith.constant 0 : index
    %c0_16 = arith.constant 0 : index
    %19 = vector.load %arg8[%c0_15, %c0_16] : memref<1x16xf32, #tpu.memory_space<vmem>>, vector<1x16xf32>
    %20 = vector.broadcast %19 : vector<1x16xf32> to vector<8x16xf32>
    %21 = arith.addf %18, %20 : vector<8x16xf32>
    %22 = arith.truncf %21 : vector<8x16xf32> to vector<8x16xbf16>
    %c0_17 = arith.constant 0 : index
    %c0_18 = arith.constant 0 : index
    %23 = vector.load %arg9[%c0_17, %c0_18] : memref<8x16xbf16, #tpu.memory_space<vmem>>, vector<8x16xbf16>
    tpu.vector_store %arg9[%c0_17, %c0_18], %22 {strides = array<i32>} : memref<8x16xbf16, #tpu.memory_space<vmem>>, vector<8x16xbf16>,
    return
  }
  func.func @transform_0(%arg0: i32) -> (i32, i32) {
    %c0_i32 = arith.constant 0 : i32
    %c0_i32_0 = arith.constant 0 : i32
    return %arg0, %c0_i32 : i32, i32
  }
  func.func @transform_1(%arg0: i32) -> (i32, i32) {
    %c0_i32 = arith.constant 0 : i32
    %c0_i32_0 = arith.constant 0 : i32
    return %arg0, %c0_i32 : i32, i32
  }
  func.func @transform_2(%arg0: i32) -> (i32, i32) {
    %c0_i32 = arith.constant 0 : i32
    %c0_i32_0 = arith.constant 0 : i32
    %c0_i32_1 = arith.constant 0 : i32
    return %c0_i32, %c0_i32_0 : i32, i32
  }
  func.func @transform_3(%arg0: i32) -> (i32, i32) {
    %c0_i32 = arith.constant 0 : i32
    %c0_i32_0 = arith.constant 0 : i32
    %c0_i32_1 = arith.constant 0 : i32
    return %c0_i32, %c0_i32_0 : i32, i32
  }
  func.func @transform_4(%arg0: i32) -> (i32, i32) {
    %c0_i32 = arith.constant 0 : i32
    %c0_i32_0 = arith.constant 0 : i32
    %c0_i32_1 = arith.constant 0 : i32
    return %c0_i32, %c0_i32_0 : i32, i32
  }
  func.func @transform_5(%arg0: i32) -> (i32, i32) {
    %c0_i32 = arith.constant 0 : i32
    %c0_i32_0 = arith.constant 0 : i32
    %c0_i32_1 = arith.constant 0 : i32
    return %c0_i32, %c0_i32_0 : i32, i32
  }
  func.func @transform_6(%arg0: i32) -> (i32, i32) {
    %c0_i32 = arith.constant 0 : i32
    %c0_i32_0 = arith.constant 0 : i32
    %c0_i32_1 = arith.constant 0 : i32
    return %c0_i32, %c0_i32_0 : i32, i32
  }
  func.func @transform_7(%arg0: i32) -> (i32, i32) {
    %c0_i32 = arith.constant 0 : i32
    %c0_i32_0 = arith.constant 0 : i32
    %c0_i32_1 = arith.constant 0 : i32
    return %c0_i32, %c0_i32_0 : i32, i32
  }
  func.func @transform_8(%arg0: i32) -> (i32, i32) {
    %c0_i32 = arith.constant 0 : i32
    %c0_i32_0 = arith.constant 0 : i32
    return %arg0, %c0_i32 : i32, i32
  }
}

</mosaic_0001>

<bundles_post_ra>
// kernel: tpu_custom_call.1
= control target key start
LH: loop header
LB: loop body
LE: loop exit
PB: predicated region body
PF: predicated region fallthrough
CT: control target
= control target key end

     0   :  { %13 = vsyncpa [#allocation3], 0  ;;  %s458_s0 = inlined_call_operand.hbm [shape: bf16[8,32], index: 0, kind: input, shape index: {}]   ;;  %s459_s1 = inlined_call_operand.hbm [shape: bf16[8,48], index: 1, kind: input, shape index: {}]   ;;  %s460_s2 = inlined_call_operand.vmem [shape: bf16[32,64], index: 2, kind: input, shape index: {}]   ;;  %s461_s3 = inlined_call_operand.vmem [shape: f32[1,64], index: 3, kind: input, shape index: {}]   ;;  %s462_s4 = inlined_call_operand.vmem [shape: bf16[48,64], index: 4, kind: input, shape index: {}]   ;;  %s463_s5 = inlined_call_operand.vmem [shape: f32[1,64], index: 5, kind: input, shape index: {}]   ;;  %s464_s6 = inlined_call_operand.vmem [shape: bf16[64,16], index: 6, kind: input, shape index: {}]   ;;  %s465_s7 = inlined_call_operand.vmem [shape: f32[1,16], index: 7, kind: input, shape index: {}]   ;;  %s466_s8 = inlined_call_operand.hbm [shape: bf16[8,16], index: 8, kind: output, shape index: {}]  }
   0x1   :  { %14 = vsyncpa [#allocation6], 0 }
   0x2   :  { %15 = vsyncpa [#allocation4], 0  ;;  %s21_s29 = sshll.u32 %s458_s0, 4  ;;  %s365_s30 = smov [#allocation2]   ;;  %s22_s29 = int_to_ptr.hbm [resolvable:$true] %s21_s29 }
   0x3   :  { %s23_s9 = sshll.u32 %s365_s30, 4  ;;  %s32_s12 = sshll.u32 %s459_s1, 4  ;;  %s24_s9 = int_to_ptr.vmem [resolvable:$true] %s23_s9  ;;  %s33_s12 = int_to_ptr.hbm [resolvable:$true] %s32_s12 }
   0x4   :  { %26 = dma.hbm_to_vmem [thread:$0]  %s22_s29, 64, %s24_s9, [#allocation3]  }
   0x5   :  { %s366_s13 = smov [#allocation5]  }
   0x6   :  { %s34_s14 = sshll.u32 %s366_s13, 4  ;;  %s35_s14 = int_to_ptr.vmem [resolvable:$true] %s34_s14 }
   0x7   :  { %37 = dma.hbm_to_vmem [thread:$0]  %s33_s12, 64, %s35_s14, [#allocation6]  }
   0x8   :  { %359 = dma.done.wait [#allocation3], 64  }
   0x9   :  { %360 = vsyncadd [#allocation3], 4294967232 }
   0xa   :  { %361 = dma.done.wait [#allocation6], 64  }
   0xb   :  { %362 = vsyncadd [#allocation6], 4294967232  ;;  %v269_v0 = vld [vmem:[%s460_s2 + $0x8] sm:$0xff]  ;;  %v272_v1 = vld [vmem:[%s462_s4 + $0x10] sm:$0xff]  ;;  %vm87_vm0 = vcmask 261120   ;;  %vm130_vm1 = vcmask 392192  }
   0xc   :  { %97 = vmatpush.bf16.msra.mxu0 %v269_v0  ;;  %139 = vmatpush.bf16.msra.mxu1 %v272_v1  ;;  %v268_v2 = vld [vmem:[%s460_s2] sm:$0xff]  ;;  %v271_v3 = vld [vmem:[%s462_s4 + $0x8] sm:$0xff]  ;;  %v276_v7 = vld [vmem:[%s464_s6 + $0x18] sm:$0xff]  ;;  %vm191_vm2 = vcmask 523264   ;;  %s218_s14 = sshll.u32 %s466_s8, 4  ;;  %vm209_vm3 = vcmask 125952   ;;  %s219_s14 = int_to_ptr.hbm [resolvable:$true] %s218_s14 }
   0xd   :  { %v59_v4 = vld [vmem:[#allocation2] sm:$0xf]  ;;  %v64_v6 = vld [vmem:[#allocation5] sm:$0xf]  ;;  %199 = vmatpush.bf16.msra.mxu2 %v276_v7  ;;  %v275_v8 = vld [vmem:[%s464_s6 + $0x10] sm:$0xff] }
   0xe   :  { %v270_v5 = vld [vmem:[%s462_s4] sm:$0xff]  ;;  %v274_v9 = vld [vmem:[%s464_s6 + $0x8] sm:$0xff] }
   0xf   :  { %v273_v10 = vld [vmem:[%s464_s6] sm:$0xff]  ;;  %s367_s6 = smov [#allocation7]  }
  0x10   :  { %98 = vmatpush.bf16.msra.mxu0 %v268_v2  ;;  %140 = vmatpush.bf16.msra.mxu1 %v271_v3  ;;  %v280_v11 = vld [vmem:[%s461_s3] ss:$0 sm:$0xff]  ;;  %s216_s11 = sshll.u32 %s367_s6, 4  ;;  %s217_s11 = int_to_ptr.vmem [resolvable:$true] %s216_s11 }
  0x11   :  { %200 = vmatpush.bf16.msra.mxu2 %v275_v8  ;;  %v281_v14 = vld [vmem:[%s463_s5] ss:$0 sm:$0xff] }
  0x12   :  { %v282_v31 = vld [vmem:[%s465_s7] ss:$0 sm:$0xff] }
  0x13   :  { %237 = vmatmul.msk.bf16.vlgmr.msra.gmra.mxu0 %vm87_vm0, %v59_v4 }
  0x14   :  { %141 = vmatpush.bf16.msra.mxu1 %v270_v5 }
  0x15   :  { %201 = vmatpush.bf16.msra.mxu2 %v274_v9 }
  0x17   :  { %250 = vmatmul.msk.bf16.vlgmr.msra.gmra.mxu1 %vm130_vm1, %v64_v6 }
  0x19   :  { %202 = vmatpush.bf16.msra.mxu2 %v273_v10 }
  0x90   :  { %v100_v12 = vpop.f32.mrf.mxu0 }
  0x91   :  { %v101_v13 = vadd.f32 %v280_v11, %v100_v12 }
  0x93   :  { %v104_v15 = vpack.c.bf16 %v101_v13, %v101_v13 }
  0x94   :  { %v143_v16 = vpop.f32.mrf.mxu1 }
  0x95   :  { %v105_v17 = vunpack.c.l.bf16 %v104_v15  ;;  %v144_v18 = vadd.f32 %v281_v14, %v143_v16 }
  0x97   :  { %283 = vtanh.f32 %v105_v17  ;;  %v147_v19 = vpack.c.bf16 %v144_v18, %v144_v18 }
  0x98   :  { %v102_v20 = vpop.f32.mrf.mxu0 }
  0x99   :  { %v148_v21 = vunpack.c.l.bf16 %v147_v19 }
  0x9b   :  { %285 = vtanh.f32 %v148_v21 }
  0x9c   :  { %v145_v22 = vpop.f32.mrf.mxu1 }
  0x9d   :  { %v284_v23 = vpop.eup %283 }
  0x9e   :  { %v107_v24 = vpack.c.bf16 %v284_v23, %v284_v23 }
  0xa0   :  { %v151_v26 = vunpack.c.l.bf16 %v107_v24 }
  0xa1   :  { %v286_v25 = vpop.eup %285 }
  0xa2   :  { %v150_v27 = vpack.c.bf16 %v286_v25, %v286_v25 }
  0xa4   :  { %v152_v28 = vunpack.c.l.bf16 %v150_v27 }
  0xa6   :  { %v153_v29 = vmul.f32 %v152_v28, %v151_v26 }
  0xa8   :  { %v154_v30 = vpack.c.bf16 %v153_v29, %v153_v29 }
  0xaa   :  { %267 = vmatmul.msk.bf16.vlgmr.msra.gmra.mxu2 %vm191_vm2, %v154_v30 }
 0x12d   :  { %v204_v32 = vpop.f32.mrf.mxu2 }
 0x12e   :  { %v205_v33 = vadd.f32 %v282_v31, %v204_v32 }
 0x130   :  { %v208_v34 = vpack.c.bf16 %v205_v33, %v205_v33 }
 0x132   :  { %210 = vst.msk [vmem:[#allocation7] sm:$0xf] %vm209_vm3, %v208_v34 }
 0x133   :  { %221 = dma.vmem_to_hbm [thread:$0]  %s217_s11, 64, %s219_s14, [#allocation4]  }
 0x135   :  { %v206_v35 = vpop.f32.mrf.mxu2 }
 0x136   :  { %363 = dma.done.wait [#allocation4], 64  }
 0x137   :  { %364 = vsyncadd [#allocation4], 4294967232 }
 0x138   :  { %226 = vsyncpa [#allocation3], 1 }
 0x139   :  { %227 = vsyncpa [#allocation6], 1 }
 0x13a   :  { %228 = vsyncpa [#allocation4], 1 }

</bundles_post_ra>
